<compile_context>
chip_gen: v5e
topology: v5e:2x2
jax: 0.10.0
libtpu: 0.0.40
codegen_flags: <defaults>
</compile_context>

<pallas_src>
import jax
import jax.numpy as jnp
from jax.experimental import pallas as pl
from jax.experimental.pallas import tpu as pltpu

_LANES = 128
_WIDTH_CANDIDATES = (4096, 2048, 1024, 512, 256, 128)


def _abs_tanh_kernel(x_ref, o_ref):
    # tanh -> EUP, abs -> VPU; both pure elementwise on the tile.
    o_ref[...] = jnp.abs(jnp.tanh(x_ref[...]))


def _sublane_unit(dtype) -> int:
    # Sublane packing: 4-byte dtypes tile at 8 rows, 2-byte at 16, 1-byte at 32.
    itemsize = jnp.dtype(dtype).itemsize
    return {4: 8, 2: 16, 1: 32}.get(itemsize, 8)


def _target_block_bytes():
    """Generation-tuned block size and (optional) scoped-VMEM limit."""
    try:
        kind = jax.devices()[0].device_kind.lower()
    except Exception:  # no device info -> conservative default
        return 2 * 1024 * 1024, None
    if "v7" in kind or "7x" in kind:
        # ~6 MiB blocks; 4 resident buffers ~= 24 MiB, above the 32 MiB scoped
        # default's comfort zone once compiler scratch is added -> raise limit.
        return 6 * 1024 * 1024, 40 << 20
    if "v6" in kind:
        # 4 buffers x 4 MiB = 16 MiB, well under v6e's 32 MiB scoped default.
        return 4 * 1024 * 1024, None
    # v5e (and unknown): keep 2 MiB blocks; 4 x 4 MiB would eat the entire
    # 16 MiB scoped default and risk OOM with compiler scratch on top.
    return 2 * 1024 * 1024, None


def abs_tanh(x: jax.Array) -> jax.Array:
    """abs(tanh(x)) via a Pallas TPU kernel. Preserves shape and dtype."""
    orig_shape = x.shape
    dtype = x.dtype
    itemsize = jnp.dtype(dtype).itemsize
    n = x.size
    if n == 0:
        return x

    sub = _sublane_unit(dtype)
    block_bytes, vmem_limit = _target_block_bytes()

    x_flat = jnp.ravel(x)

    # Pick the widest lane-dense last dim that divides n; prefer one that also
    # gives at least one full sublane group of rows.
    width = None
    for cand in _WIDTH_CANDIDATES:
        if n % cand == 0 and (n // cand) >= sub:
            width = cand
            break
    if width is None:
        for cand in _WIDTH_CANDIDATES:
            if n % cand == 0:
                width = cand
                break

    padded = False
    if width is None:
        # TODO(synk): the ragged lane tail could be handled fully in-kernel
        # with a masked store; only reached when n is not a multiple of 128.
        width = _LANES
        n_pad = pl.cdiv(n, width) * width
        x_flat = jnp.pad(x_flat, (0, n_pad - n))
        padded = True
    else:
        n_pad = n

    rows = n_pad // width
    x2d = x_flat.reshape(rows, width)

    # Row-tile selection: aim at the generation block-byte target, keep tr a
    # multiple of the sublane unit, and keep the grid at >= 2 steps when the
    # data allows (pipeline overlap + v7x dual-TC sharding).  The grid does
    # NOT have to divide rows: the ragged last block is padded/masked.
    if rows < sub:
        tr = rows  # block equals the full (tiny) array dim
    else:
        target_rows = max(sub, (block_bytes // (width * itemsize)) // sub * sub)
        tr = min(target_rows, (rows // sub) * sub)
        if rows >= 2 * sub:
            half = max(sub, (pl.cdiv(rows, 2) // sub) * sub)
            tr = min(tr, half)
        tr = max(sub, (tr // sub) * sub)

    grid = (pl.cdiv(rows, tr),)

    cp_kwargs = dict(dimension_semantics=("parallel",))
    if vmem_limit is not None:
        cp_kwargs["vmem_limit_bytes"] = vmem_limit

    out2d = pl.pallas_call(
        _abs_tanh_kernel,
        out_shape=jax.ShapeDtypeStruct((rows, width), dtype),
        grid_spec=pltpu.PrefetchScalarGridSpec(
            num_scalar_prefetch=0,
            grid=grid,
            in_specs=[pl.BlockSpec((tr, width), lambda i: (i, 0))],
            out_specs=pl.BlockSpec((tr, width), lambda i: (i, 0)),
        ),
        compiler_params=pltpu.CompilerParams(**cp_kwargs),
    )(x2d)

    if padded:
        return out2d.reshape(-1)[:n].reshape(orig_shape)
    return out2d.reshape(orig_shape)


if __name__ == "__main__":
    key = jax.random.PRNGKey(0)

    # Primary check: shape consistent with the module's usage.
    x = jax.random.normal(key, (2, 4, 16, 16), dtype=jnp.float32)
    y = abs_tanh(x)
    jax.block_until_ready(y)
    y_ref = jnp.abs(jnp.tanh(x))
    assert y.shape == x.shape and y.dtype == x.dtype
    assert jnp.allclose(y, y_ref, atol=1e-6, rtol=1e-6)

    # Secondary checks: ragged last block (non-dividing grid) and a
    # non-128-multiple element count (padded lane tail).
    for shape in [(16, 520), (3, 5, 7)]:
        key, sub_key = jax.random.split(key)
        xs = jax.random.normal(sub_key, shape, dtype=jnp.float32)
        ys = abs_tanh(xs)
        jax.block_until_ready(ys)
        assert ys.shape == xs.shape and ys.dtype == xs.dtype
        assert jnp.allclose(ys, jnp.abs(jnp.tanh(xs)), atol=1e-6, rtol=1e-6)

    print("KERNEL_OK")
</pallas_src>

<mosaic_0001>
module attributes {stable_mosaic.version = 11 : i64} {
  func.func @_abs_tanh_kernel(%arg0: i32, %arg1: memref<8x256xf32, #tpu.memory_space<vmem>>, %arg2: memref<8x256xf32, #tpu.memory_space<vmem>>) attributes {dimension_semantics = [#tpu.dimension_semantics<parallel>], iteration_bounds = array<i64: 1>, scalar_prefetch = 0 : i64, scratch_operands = 0 : i64, tpu.core_type = #tpu.core_type<tc>, window_params = [{transform_indices = @transform_0, window_bounds = array<i64: 8, 256>}, {transform_indices = @transform_1, window_bounds = array<i64: 8, 256>}]} {
    %c0 = arith.constant 0 : index
    %c0_0 = arith.constant 0 : index
    %0 = vector.load %arg1[%c0, %c0_0] : memref<8x256xf32, #tpu.memory_space<vmem>>, vector<8x256xf32>
    %1 = math.tanh %0 : vector<8x256xf32>
    %2 = math.absf %1 : vector<8x256xf32>
    %c0_1 = arith.constant 0 : index
    %c0_2 = arith.constant 0 : index
    %3 = vector.load %arg2[%c0_1, %c0_2] : memref<8x256xf32, #tpu.memory_space<vmem>>, vector<8x256xf32>
    tpu.vector_store %arg2[%c0_1, %c0_2], %2 {strides = array<i32>} : memref<8x256xf32, #tpu.memory_space<vmem>>, vector<8x256xf32>,
    return
  }
  func.func @transform_0(%arg0: i32) -> (i32, i32) {
    %c0_i32 = arith.constant 0 : i32
    %c0_i32_0 = arith.constant 0 : i32
    return %arg0, %c0_i32 : i32, i32
  }
  func.func @transform_1(%arg0: i32) -> (i32, i32) {
    %c0_i32 = arith.constant 0 : i32
    %c0_i32_0 = arith.constant 0 : i32
    return %arg0, %c0_i32 : i32, i32
  }
}

</mosaic_0001>

<bundles_post_ra>
// kernel: tpu_custom_call.1
= control target key start
LH: loop header
LB: loop body
LE: loop exit
PB: predicated region body
PF: predicated region fallthrough
CT: control target
= control target key end

     0   :  { %6 = vsyncpa [#allocation3], 0  ;;  %s124_s0 = inlined_call_operand.hbm [shape: f32[8,256], index: 0, kind: input, shape index: {}]   ;;  %s125_s1 = inlined_call_operand.hbm [shape: f32[8,256], index: 1, kind: output, shape index: {}]  }
   0x1   :  { %7 = vsyncpa [#allocation4], 0  ;;  %s13_s8 = sshll.u32 %s124_s0, 4  ;;  %s106_s9 = smov [#allocation2]   ;;  %s14_s8 = int_to_ptr.hbm [resolvable:$true] %s13_s8 }
   0x2   :  { %s15_s10 = sshll.u32 %s106_s9, 4  ;;  %s16_s10 = int_to_ptr.vmem [resolvable:$true] %s15_s10 }
   0x3   :  { %18 = dma.hbm_to_vmem [thread:$0]  %s14_s8, 256, %s16_s10, [#allocation3]  }
   0x4   :  { %102 = dma.done.wait [#allocation3], 256  }
   0x5   :  { %103 = vsyncadd [#allocation3], 4294967040  ;;  %v23_v0 = vld [vmem:[#allocation2] sm:$0xff]  ;;  %v24_v1 = vld [vmem:[#allocation2 + $0x8] sm:$0xff]  ;;  %s107_s11 = smov [#allocation5]   ;;  %s38_s15 = sshll.u32 %s125_s1, 4  ;;  %s39_s15 = int_to_ptr.hbm [resolvable:$true] %s38_s15 }
   0x6   :  { %50 = vtanh.f32 %v23_v0  ;;  %s36_s12 = sshll.u32 %s107_s11, 4  ;;  %s37_s12 = int_to_ptr.vmem [resolvable:$true] %s36_s12 }
   0x7   :  { %52 = vtanh.f32 %v24_v1 }
   0xc   :  { %v51_v2 = vpop.eup %50 }
   0xd   :  { %v53_v3 = vpop.eup %52  ;;  %v27_v4 = vand.u32 2147483647, %v51_v2 }
   0xe   :  { %v28_v5 = vand.u32 2147483647, %v53_v3 }
   0xf   :  { %29 = vst [vmem:[#allocation5] sm:$0xff] %v27_v4 }
  0x10   :  { %30 = vst [vmem:[#allocation5 + $0x8] sm:$0xff] %v28_v5 }
  0x11   :  { %41 = dma.vmem_to_hbm [thread:$0]  %s37_s12, 256, %s39_s15, [#allocation4]  }
  0x12   :  { %104 = dma.done.wait [#allocation4], 256  }
  0x13   :  { %105 = vsyncadd [#allocation4], 4294967040 }
  0x14   :  { %46 = vsyncpa [#allocation3], 1 }
  0x15   :  { %47 = vsyncpa [#allocation4], 1 }

</bundles_post_ra>
